<compile_context>
chip_gen: v6e
topology: v6e:2x2x1
jax: 0.10.0
libtpu: 0.0.40
codegen_flags: <defaults>
</compile_context>

<pallas_src>
import math

import jax
import jax.numpy as jnp
from jax.experimental import pallas as pl
from jax.experimental.pallas import tpu as pltpu


_SQRT_2_OVER_PI = math.sqrt(2.0 / math.pi)
_GELU_C1 = 0.044715 * _SQRT_2_OVER_PI


def _gelu_tanh(x):
    # PyTorch nn.GELU(approximate='tanh') with constants pre-folded:
    #   0.5 * x * (1 + tanh(x * (c0 + c1 * x^2)))
    x2 = x * x
    inner = x * (_SQRT_2_OVER_PI + _GELU_C1 * x2)
    return 0.5 * x * (1.0 + jnp.tanh(inner))  # tanh rides the (otherwise idle) EUP slot


def mlp_kernel(x_ref, wfc_ref, bfc_ref, wproj_ref, bproj_ref, o_ref, acc_ref):
    # x_ref:     (tile_m, C)
    # wfc_ref:   (C, tile_h)     bfc_ref:   (1, tile_h)
    # wproj_ref: (tile_h, C)     bproj_ref: (1, C)
    # o_ref:     (tile_m, C)     acc_ref:   (tile_m, C) f32 scratch
    k = pl.program_id(1)

    @pl.when(k == 0)
    def _():
        acc_ref[...] = jnp.zeros_like(acc_ref)

    # First matmul over this hidden chunk: (tile_m, C) @ (C, tile_h) -> f32.
    h = jnp.dot(x_ref[...], wfc_ref[...], preferred_element_type=jnp.float32)
    h = h + bfc_ref[...].astype(jnp.float32)
    h = _gelu_tanh(h)  # keep elementwise GELU in f32 (v5e has no bf16 VPU/EUP)

    # Second matmul: accumulate this chunk's contribution to the output tile.
    acc_ref[...] += jnp.dot(h.astype(wproj_ref.dtype), wproj_ref[...],
                            preferred_element_type=jnp.float32)

    @pl.when(k == pl.num_programs(1) - 1)
    def _():
        out = acc_ref[...] + bproj_ref[...].astype(jnp.float32)
        o_ref[...] = out.astype(o_ref.dtype)


def prepare_mlp_params(w_fc, b_fc, w_proj, b_proj):
    """Hoist the layout transform out of the hot path (call once, reuse).

    PyTorch layout: w_fc [4C, C], w_proj [C, 4C]. The kernel wants lane-dense
    x @ W, i.e. W_fc^T [C, 4C] and W_proj^T [4C, C], and 2-D biases."""
    return (jnp.asarray(w_fc).T,
            jnp.asarray(b_fc).reshape(1, -1),
            jnp.asarray(w_proj).T,
            jnp.asarray(b_proj).reshape(1, -1))


def _pick_m_tile(M, target=256):
    # Block second-minor dim must be a multiple of 8 OR equal the full dim.
    # M <= target -> full dim (always legal); else 256 (8-aligned, 128-aligned
    # for v5e too); trailing padded rows are never written back.
    return M if M <= target else target


def _pick_h_tile(H, target=512):
    if H <= target:
        return H
    # Must divide H exactly (padded H-chunks would pollute the accumulator)
    # and be lane-aligned (multiple of 128) for a legal layout.
    for t in range(target, 127, -1):
        if H % t == 0 and t % 128 == 0:
            return t
    return H  # fall back: whole hidden dim resident (always layout-legal)


def _vmem_bytes_estimate(tile_m, tile_h, C, dtype):
    isz = jnp.dtype(dtype).itemsize
    dbl = 2  # default double-buffering of pipelined blocks
    b = 0
    b += dbl * tile_m * C * isz        # x tile
    b += dbl * C * tile_h * isz        # W_fc^T chunk
    b += dbl * 8 * tile_h * isz        # b_fc chunk (sublane-padded)
    b += dbl * tile_h * C * isz        # W_proj^T chunk
    b += dbl * 8 * C * isz             # b_proj
    b += dbl * tile_m * C * isz        # out tile
    b += tile_m * C * 4                # f32 accumulator scratch
    b += 2 * tile_m * tile_h * 4       # f32 hidden chunk (pre/post GELU)
    return b


def mlp_forward(x, wfc_t, bfc_2d, wproj_t, bproj_2d, *,
                tile_m=None, tile_h=None,
                vmem_budget_bytes=48 * 1024 * 1024):
    """x: [B, T, C]; wfc_t: [C, 4C]; bfc_2d: [1, 4C]; wproj_t: [4C, C];
       bproj_2d: [1, C]. Build the params once with prepare_mlp_params()."""
    B, T, C = x.shape
    H = wfc_t.shape[1]
    M = B * T
    x2 = x.reshape(M, C)

    if tile_m is None:
        tile_m = _pick_m_tile(M)
    if tile_h is None:
        tile_h = _pick_h_tile(H)

    # Shrink the hidden chunk until the working set fits the (v7x-safe) budget.
    while (_vmem_bytes_estimate(tile_m, tile_h, C, x.dtype) > vmem_budget_bytes
           and tile_h > 128 and tile_h % 2 == 0 and H % (tile_h // 2) == 0):
        tile_h //= 2

    grid = (pl.cdiv(M, tile_m), H // tile_h)

    vmem_limit = int(min(
        max(2 * _vmem_bytes_estimate(tile_m, tile_h, C, x.dtype),
            16 * 1024 * 1024),
        56 * 1024 * 1024))

    out2 = pl.pallas_call(
        mlp_kernel,
        out_shape=jax.ShapeDtypeStruct((M, C), x.dtype),
        grid_spec=pltpu.PrefetchScalarGridSpec(
            num_scalar_prefetch=0,
            grid=grid,
            in_specs=[
                pl.BlockSpec((tile_m, C), lambda i, k: (i, 0)),   # x tile
                pl.BlockSpec((C, tile_h), lambda i, k: (0, k)),   # W_fc^T chunk
                pl.BlockSpec((1, tile_h), lambda i, k: (0, k)),   # b_fc chunk
                pl.BlockSpec((tile_h, C), lambda i, k: (k, 0)),   # W_proj^T chunk
                pl.BlockSpec((1, C), lambda i, k: (0, 0)),        # b_proj
            ],
            out_specs=pl.BlockSpec((tile_m, C), lambda i, k: (i, 0)),
            scratch_shapes=[pltpu.VMEM((tile_m, C), jnp.float32)],
        ),
        compiler_params=pltpu.CompilerParams(
            dimension_semantics=("parallel", "arbitrary"),
            vmem_limit_bytes=vmem_limit),
    )(x2, wfc_t, bfc_2d, wproj_t, bproj_2d)

    return out2.reshape(B, T, C)


def reference_mlp(x, w_fc, b_fc, w_proj, b_proj):
    h = jnp.einsum("btc,hc->bth", x, w_fc) + b_fc
    h = _gelu_tanh(h)
    return jnp.einsum("bth,ch->btc", h, w_proj) + b_proj


if __name__ == "__main__":
    # Small GPT-like config: n_embd = 32, batch = 2, seq = 8.
    B, T, C = 2, 8, 32
    H = 4 * C

    key = jax.random.PRNGKey(0)
    kx, k1, k2, k3, k4 = jax.random.split(key, 5)

    x = jax.random.normal(kx, (B, T, C), dtype=jnp.float32)
    # Deterministic init mimicking nn.Linear default (uniform +-1/sqrt(fan_in)).
    w_fc = jax.random.uniform(k1, (H, C), minval=-1.0, maxval=1.0) / math.sqrt(C)
    b_fc = jax.random.uniform(k2, (H,), minval=-1.0, maxval=1.0) / math.sqrt(C)
    w_proj = jax.random.uniform(k3, (C, H), minval=-1.0, maxval=1.0) / math.sqrt(H)
    b_proj = jax.random.uniform(k4, (C,), minval=-1.0, maxval=1.0) / math.sqrt(H)

    ref = reference_mlp(x, w_fc, b_fc, w_proj, b_proj)

    # f32 path: matches the PyTorch module semantics tightly.
    params_f32 = prepare_mlp_params(w_fc, b_fc, w_proj, b_proj)
    out = jax.block_until_ready(mlp_forward(x, *params_f32))
    assert out.shape == (B, T, C), out.shape
    max_err = float(jnp.max(jnp.abs(out - ref)))
    assert jnp.allclose(out, ref, atol=1e-4, rtol=1e-4), max_err

    # bf16 MXU path (production setting on v6e/v7x): bf16 inputs/weights with
    # f32 accumulation and f32 GELU inside the kernel; looser tolerance.
    params_bf16 = tuple(p.astype(jnp.bfloat16) for p in params_f32)
    out_bf16 = jax.block_until_ready(
        mlp_forward(x.astype(jnp.bfloat16), *params_bf16))
    max_err_bf16 = float(jnp.max(jnp.abs(out_bf16.astype(jnp.float32) - ref)))
    assert max_err_bf16 < 0.1, max_err_bf16

    # TODO(synk): optional fp8(e4m3) weight path with per-channel scales for v7x.
    print("KERNEL_OK")
</pallas_src>

<mosaic_0001>
module attributes {stable_mosaic.version = 11 : i64} {
  func.func @mlp_kernel(%arg0: i32, %arg1: i32, %arg2: memref<16x32xf32, #tpu.memory_space<vmem>>, %arg3: memref<32x128xf32, #tpu.memory_space<vmem>>, %arg4: memref<1x128xf32, #tpu.memory_space<vmem>>, %arg5: memref<128x32xf32, #tpu.memory_space<vmem>>, %arg6: memref<1x32xf32, #tpu.memory_space<vmem>>, %arg7: memref<16x32xf32, #tpu.memory_space<vmem>>, %arg8: memref<16x32xf32, #tpu.memory_space<vmem>>) attributes {dimension_semantics = [#tpu.dimension_semantics<parallel>, #tpu.dimension_semantics<arbitrary>], iteration_bounds = array<i64: 1, 1>, scalar_prefetch = 0 : i64, scratch_operands = 1 : i64, tpu.core_type = #tpu.core_type<tc>, window_params = [{transform_indices = @transform_0, window_bounds = array<i64: 16, 32>}, {transform_indices = @transform_1, window_bounds = array<i64: 32, 128>}, {transform_indices = @transform_2, window_bounds = array<i64: 1, 128>}, {transform_indices = @transform_3, window_bounds = array<i64: 128, 32>}, {pipeline_mode = #tpu.pipeline_mode<synchronous>, transform_indices = @transform_4, window_bounds = array<i64: 1, 32>}, {transform_indices = @transform_5, window_bounds = array<i64: 16, 32>}]} {
    %c0_i32 = arith.constant 0 : i32
    %0 = arith.cmpi eq, %arg1, %c0_i32 : i32
    %1 = arith.extui %0 : i1 to i32
    %c0_i32_0 = arith.constant 0 : i32
    %2 = arith.cmpi ne, %1, %c0_i32_0 : i32
    scf.if %2 {
      %cst_19 = arith.constant 0.000000e+00 : f32
      %29 = vector.broadcast %cst_19 : f32 to vector<16x32xf32>
      %c0_20 = arith.constant 0 : index
      %c0_21 = arith.constant 0 : index
      %30 = vector.load %arg8[%c0_20, %c0_21] : memref<16x32xf32, #tpu.memory_space<vmem>>, vector<16x32xf32>
      tpu.vector_store %arg8[%c0_20, %c0_21], %29 {strides = array<i32>} : memref<16x32xf32, #tpu.memory_space<vmem>>, vector<16x32xf32>,
    } else {
    }
    %c0 = arith.constant 0 : index
    %c0_1 = arith.constant 0 : index
    %3 = vector.load %arg2[%c0, %c0_1] : memref<16x32xf32, #tpu.memory_space<vmem>>, vector<16x32xf32>
    %c0_2 = arith.constant 0 : index
    %c0_3 = arith.constant 0 : index
    %4 = vector.load %arg3[%c0_2, %c0_3] : memref<32x128xf32, #tpu.memory_space<vmem>>, vector<32x128xf32>
    %cst = arith.constant dense<0.000000e+00> : vector<16x128xf32>
    %5 = tpu.matmul %3, %4, %cst {dimension_numbers = #tpu.dot_dimension_numbers<[1], [0], [0], [1], [0, 0, 1, 1], [], []>} : vector<16x32xf32>, vector<32x128xf32>, vector<16x128xf32> -> vector<16x128xf32>
    %c0_4 = arith.constant 0 : index
    %c0_5 = arith.constant 0 : index
    %6 = vector.load %arg4[%c0_4, %c0_5] : memref<1x128xf32, #tpu.memory_space<vmem>>, vector<1x128xf32>
    %7 = vector.broadcast %6 : vector<1x128xf32> to vector<16x128xf32>
    %8 = arith.addf %5, %7 : vector<16x128xf32>
    %9 = arith.mulf %8, %8 : vector<16x128xf32>
    %cst_6 = arith.constant 0.0356774069 : f32
    %10 = vector.broadcast %cst_6 : f32 to vector<16x128xf32>
    %11 = arith.mulf %10, %9 : vector<16x128xf32>
    %cst_7 = arith.constant 0.797884583 : f32
    %12 = vector.broadcast %cst_7 : f32 to vector<16x128xf32>
    %13 = arith.addf %12, %11 : vector<16x128xf32>
    %14 = arith.mulf %8, %13 : vector<16x128xf32>
    %cst_8 = arith.constant 5.000000e-01 : f32
    %15 = vector.broadcast %cst_8 : f32 to vector<16x128xf32>
    %16 = arith.mulf %15, %8 : vector<16x128xf32>
    %17 = math.tanh %14 : vector<16x128xf32>
    %cst_9 = arith.constant 1.000000e+00 : f32
    %18 = vector.broadcast %cst_9 : f32 to vector<16x128xf32>
    %19 = arith.addf %18, %17 : vector<16x128xf32>
    %20 = arith.mulf %16, %19 : vector<16x128xf32>
    %c0_10 = arith.constant 0 : index
    %c0_11 = arith.constant 0 : index
    %21 = vector.load %arg8[%c0_10, %c0_11] : memref<16x32xf32, #tpu.memory_space<vmem>>, vector<16x32xf32>
    %c0_12 = arith.constant 0 : index
    %c0_13 = arith.constant 0 : index
    %22 = vector.load %arg5[%c0_12, %c0_13] : memref<128x32xf32, #tpu.memory_space<vmem>>, vector<128x32xf32>
    %cst_14 = arith.constant dense<0.000000e+00> : vector<16x32xf32>
    %23 = tpu.matmul %20, %22, %cst_14 {dimension_numbers = #tpu.dot_dimension_numbers<[1], [0], [0], [1], [0, 0, 1, 1], [], []>} : vector<16x128xf32>, vector<128x32xf32>, vector<16x32xf32> -> vector<16x32xf32>
    %24 = arith.addf %21, %23 : vector<16x32xf32>
    %c0_15 = arith.constant 0 : index
    %c0_16 = arith.constant 0 : index
    %25 = vector.load %arg8[%c0_15, %c0_16] : memref<16x32xf32, #tpu.memory_space<vmem>>, vector<16x32xf32>
    tpu.vector_store %arg8[%c0_15, %c0_16], %24 {strides = array<i32>} : memref<16x32xf32, #tpu.memory_space<vmem>>, vector<16x32xf32>,
    %c0_i32_17 = arith.constant 0 : i32
    %26 = arith.cmpi eq, %arg1, %c0_i32_17 : i32
    %27 = arith.extui %26 : i1 to i32
    %c0_i32_18 = arith.constant 0 : i32
    %28 = arith.cmpi ne, %27, %c0_i32_18 : i32
    scf.if %28 {
      %c0_19 = arith.constant 0 : index
      %c0_20 = arith.constant 0 : index
      %29 = vector.load %arg8[%c0_19, %c0_20] : memref<16x32xf32, #tpu.memory_space<vmem>>, vector<16x32xf32>
      %c0_21 = arith.constant 0 : index
      %c0_22 = arith.constant 0 : index
      %30 = vector.load %arg6[%c0_21, %c0_22] : memref<1x32xf32, #tpu.memory_space<vmem>>, vector<1x32xf32>
      %31 = vector.broadcast %30 : vector<1x32xf32> to vector<16x32xf32>
      %32 = arith.addf %29, %31 : vector<16x32xf32>
      %c0_23 = arith.constant 0 : index
      %c0_24 = arith.constant 0 : index
      %33 = vector.load %arg7[%c0_23, %c0_24] : memref<16x32xf32, #tpu.memory_space<vmem>>, vector<16x32xf32>
      tpu.vector_store %arg7[%c0_23, %c0_24], %32 {strides = array<i32>} : memref<16x32xf32, #tpu.memory_space<vmem>>, vector<16x32xf32>,
    } else {
    }
    return
  }
  func.func @transform_0(%arg0: i32, %arg1: i32) -> (i32, i32) {
    %c0_i32 = arith.constant 0 : i32
    %c0_i32_0 = arith.constant 0 : i32
    return %arg0, %c0_i32 : i32, i32
  }
  func.func @transform_1(%arg0: i32, %arg1: i32) -> (i32, i32) {
    %c0_i32 = arith.constant 0 : i32
    %c0_i32_0 = arith.constant 0 : i32
    return %c0_i32, %arg1 : i32, i32
  }
  func.func @transform_2(%arg0: i32, %arg1: i32) -> (i32, i32) {
    %c0_i32 = arith.constant 0 : i32
    %c0_i32_0 = arith.constant 0 : i32
    return %c0_i32, %arg1 : i32, i32
  }
  func.func @transform_3(%arg0: i32, %arg1: i32) -> (i32, i32) {
    %c0_i32 = arith.constant 0 : i32
    %c0_i32_0 = arith.constant 0 : i32
    return %arg1, %c0_i32 : i32, i32
  }
  func.func @transform_4(%arg0: i32, %arg1: i32) -> (i32, i32) {
    %c0_i32 = arith.constant 0 : i32
    %c0_i32_0 = arith.constant 0 : i32
    %c0_i32_1 = arith.constant 0 : i32
    return %c0_i32, %c0_i32_0 : i32, i32
  }
  func.func @transform_5(%arg0: i32, %arg1: i32) -> (i32, i32) {
    %c0_i32 = arith.constant 0 : i32
    %c0_i32_0 = arith.constant 0 : i32
    return %arg0, %c0_i32 : i32, i32
  }
}

</mosaic_0001>

<bundles_post_ra>
// kernel: tpu_custom_call.1
= control target key start
LH: loop header
LB: loop body
LE: loop exit
PB: predicated region body
PF: predicated region fallthrough
CT: control target
= control target key end

     0   :  { %vm25_vm0 = vcmask 261120   ;;  %s489_s0 = inlined_call_operand.vmem [shape: f32[16,32], index: 0, kind: input, shape index: {}]   ;;  %s490_s1 = inlined_call_operand.vmem [shape: f32[32,128], index: 1, kind: input, shape index: {}]   ;;  %s491_s2 = inlined_call_operand.vmem [shape: f32[1,128], index: 2, kind: input, shape index: {}]   ;;  %s492_s3 = inlined_call_operand.vmem [shape: f32[128,32], index: 3, kind: input, shape index: {}]   ;;  %s493_s4 = inlined_call_operand.vmem [shape: f32[1,32], index: 4, kind: input, shape index: {}]   ;;  %s494_s5 = inlined_call_operand.hbm [shape: f32[16,32], index: 5, kind: output, shape index: {}]  }
   0x1   :  { %v33_v0 = vld [vmem:[%s490_s1 + $0x18] sm:$0xff]  ;;  %v32_v1 = vld [vmem:[%s490_s1 + $0x10] sm:$0xff]  ;;  %v28_v2 = vld [vmem:[%s489_s0] sm:$0xff] }
   0x2   :  { %296 = vmatprep.subr.mxu0 %v33_v0  ;;  %v31_v3 = vld [vmem:[%s490_s1 + $0x8] sm:$0xff]  ;;  %304 = vmatprep.mubr.msk.f32.mxu0 %vm25_vm0, %v28_v2 }
   0x3   :  { %297 = vmatpush3.msra.mxu0 %v33_v0 }
   0x4   :  { %10 = vsyncpa [#allocation4], 0  ;;  %298 = vmatprep.subr.mxu0 %v32_v1  ;;  %v30_v4 = vld [vmem:[%s490_s1] sm:$0xff]  ;;  %v29_v5 = vld [vmem:[%s489_s0 + $0x8] sm:$0xff]  ;;  %v372_v22 = vmov 0.0   ;;  %s373_s10 = smov [#allocation3]  }
   0x5   :  { %299 = vmatpush3.msra.mxu0 %v32_v1  ;;  %v156_v6 = vld [vmem:[%s492_s3 + $0x78] sm:$0xff]  ;;  %v155_v7 = vld [vmem:[%s492_s3 + $0x70] sm:$0xff]  ;;  %v154_v8 = vld [vmem:[%s492_s3 + $0x68] sm:$0xff]  ;;  %27 = vst.msk [vmem:[#allocation2 + $0x8] sm:$0xff] %vm25_vm0, %v372_v22  ;;  %s257_s11 = sshll.u32 %s373_s10, 4  ;;  %s258_s11 = int_to_ptr.vmem [resolvable:$true] %s257_s11 }
   0x6   :  { %300 = vmatprep.subr.mxu0 %v31_v3  ;;  %307 = vmatprep.subr.mxu1 %v156_v6  ;;  %v153_v9 = vld [vmem:[%s492_s3 + $0x60] sm:$0xff]  ;;  %v152_v10 = vld [vmem:[%s492_s3 + $0x58] sm:$0xff]  ;;  %v151_v11 = vld [vmem:[%s492_s3 + $0x50] sm:$0xff]  ;;  %26 = vst.msk [vmem:[#allocation2] sm:$0xff] %vm25_vm0, %v372_v22  ;;  %s350_s12 = scalar_lea.vmem %s258_s11, 256  ;;  %p355_p1 = scmp.lt.s32.totalorder %s258_s11, %s258_s11 }
   0x7   :  { %301 = vmatpush3.msra.mxu0 %v31_v3  ;;  %308 = vmatpush3.msra.mxu1 %v156_v6  ;;  %v150_v12 = vld [vmem:[%s492_s3 + $0x48] sm:$0xff]  ;;  %v149_v13 = vld [vmem:[%s492_s3 + $0x40] sm:$0xff]  ;;  %v148_v14 = vld [vmem:[%s492_s3 + $0x38] sm:$0xff]  ;;  %p351_p0 = scmp.ne.s32.totalorder %s258_s11, %s350_s12  ;;  %p356_p2 = scmp.lt.s32.totalorder %s350_s12, %s350_s12 }
   0x8   :  { %302 = vmatprep.subr.mxu0 %v30_v4  ;;  %309 = vmatprep.subr.mxu1 %v155_v7  ;;  %v147_v15 = vld [vmem:[%s492_s3 + $0x30] sm:$0xff]  ;;  %v146_v16 = vld [vmem:[%s492_s3 + $0x28] sm:$0xff]  ;;  %v145_v17 = vld [vmem:[%s492_s3 + $0x20] sm:$0xff] }
   0x9   :  { %303 = vmatpush3.msra.mxu0 %v30_v4  ;;  %310 = vmatpush3.msra.mxu1 %v155_v7  ;;  %v144_v18 = vld [vmem:[%s492_s3 + $0x18] sm:$0xff]  ;;  %v143_v19 = vld [vmem:[%s492_s3 + $0x10] sm:$0xff]  ;;  %v142_v20 = vld [vmem:[%s492_s3 + $0x8] sm:$0xff]  ;;  %p357_p3 = por %p356_p2, %p355_p1 }
   0xa   :  { %305 = vmatmul.mubr.msk.f32.vlgmr.msra.gmra.mxu0 %vm25_vm0, %v29_v5  ;;  %311 = vmatprep.subr.mxu1 %v154_v8  ;;  %v141_v21 = vld [vmem:[%s492_s3] sm:$0xff] }
   0xb   :  { %312 = vmatpush3.msra.mxu1 %v154_v8  ;;  %v268_v23 = vld [vmem:[%s491_s2] ss:$0 sm:$0xff]  ;;  %p358_p4 = pnand %p357_p3, %p351_p0 }
   0xc   :  { %313 = vmatprep.subr.mxu1 %v153_v9  ;;  %v140_v44 = vld [vmem:[#allocation2 + $0x8] sm:$0xff]  ;;  %v271_v50 = vld [vmem:[%s493_s4] ss:$0 sm:$0xff] }
   0xd   :  { %314 = vmatpush3.msra.mxu1 %v153_v9  ;;  %v139_v46 = vld [vmem:[#allocation2] sm:$0xff] }
   0xe   :  { %315 = vmatprep.subr.mxu1 %v152_v10 }
   0xf   :  { %316 = vmatpush3.msra.mxu1 %v152_v10 }
  0x10   :  { %317 = vmatprep.subr.mxu1 %v151_v11 }
  0x11   :  { %318 = vmatpush3.msra.mxu1 %v151_v11 }
  0x12   :  { %319 = vmatprep.subr.mxu1 %v150_v12 }
  0x13   :  { %320 = vmatpush3.msra.mxu1 %v150_v12 }
  0x14   :  { %321 = vmatprep.subr.mxu1 %v149_v13 }
  0x15   :  { %322 = vmatpush3.msra.mxu1 %v149_v13 }
  0x16   :  { %323 = vmatprep.subr.mxu1 %v148_v14 }
  0x17   :  { %324 = vmatpush3.msra.mxu1 %v148_v14 }
  0x18   :  { %325 = vmatprep.subr.mxu1 %v147_v15 }
  0x19   :  { %326 = vmatpush3.msra.mxu1 %v147_v15 }
  0x1a   :  { %327 = vmatprep.subr.mxu1 %v146_v16 }
  0x1b   :  { %328 = vmatpush3.msra.mxu1 %v146_v16 }
  0x1c   :  { %329 = vmatprep.subr.mxu1 %v145_v17 }
  0x1d   :  { %330 = vmatpush3.msra.mxu1 %v145_v17 }
  0x1e   :  { %331 = vmatprep.subr.mxu1 %v144_v18 }
  0x1f   :  { %332 = vmatpush3.msra.mxu1 %v144_v18 }
  0x20   :  { %333 = vmatprep.subr.mxu1 %v143_v19 }
  0x21   :  { %334 = vmatpush3.msra.mxu1 %v143_v19 }
  0x22   :  { %335 = vmatprep.subr.mxu1 %v142_v20 }
  0x23   :  { %336 = vmatpush3.msra.mxu1 %v142_v20 }
  0x24   :  { %337 = vmatprep.subr.mxu1 %v141_v21 }
  0x25   :  { %338 = vmatpush3.msra.mxu1 %v141_v21 }
  0xca   :  { %v306_v24 = vpop.f32.mrf.mxu0 }
  0xcb   :  { %v120_v25 = vadd.f32 %v306_v24, %v268_v23 }
  0xcc   :  { %v114_v26 = vpop.f32.mrf.mxu0 }
  0xcd   :  { %v124_v27 = vmul.f32 %v120_v25, %v120_v25  ;;  %v115_v28 = vadd.f32 %v268_v23, %v114_v26  ;;  %v132_v41 = vmul.f32 0.5, %v120_v25 }
  0xcf   :  { %v126_v29 = vmul.f32 0.035677407, %v124_v27  ;;  %v123_v30 = vmul.f32 %v115_v28, %v115_v28  ;;  %v131_v39 = vmul.f32 0.5, %v115_v28 }
  0xd1   :  { %v128_v31 = vadd.f32 0.7978846, %v126_v29  ;;  %v125_v32 = vmul.f32 0.035677407, %v123_v30 }
  0xd3   :  { %v130_v33 = vmul.f32 %v128_v31, %v120_v25  ;;  %v127_v34 = vadd.f32 0.7978846, %v125_v32 }
  0xd5   :  { %346 = vtanh.f32 %v130_v33  ;;  %v129_v35 = vmul.f32 %v127_v34, %v115_v28 }
  0xd7   :  { %348 = vtanh.f32 %v129_v35 }
  0xe2   :  { %v347_v36 = vpop.eup %346 }
  0xe3   :  { %v136_v38 = vadd.f32 1.0, %v347_v36 }
  0xe4   :  { %v349_v37 = vpop.eup %348 }
  0xe5   :  { %v135_v40 = vadd.f32 1.0, %v349_v37  ;;  %v138_v43 = vmul.f32 %v136_v38, %v132_v41 }
  0xe7   :  { %v137_v42 = vmul.f32 %v135_v40, %v131_v39 }
  0xe9   :  { %339 = vmatprep.mubr.f32.mxu1 %v137_v42 }
  0xea   :  { %340 = vmatmul.mubr.f32.vlgmr.msra.gmra.mxu1 %v138_v43 }
 0x1aa   :  { %v341_v45 = vpop.f32.mrf.mxu1 }
 0x1ab   :  { %v233_v47 = vadd.f32 %v341_v45, %v140_v44 }
 0x1ac   :  { %v223_v48 = vpop.f32.mrf.mxu1 }
 0x1ad   :  { %235 = vst.msk [vmem:[#allocation2 + $0x8] sm:$0xff] %vm25_vm0, %v233_v47  ;;  %v232_v49 = vadd.f32 %v223_v48, %v139_v46 }
 0x1af   :  { %234 = vst.msk [vmem:[#allocation2] sm:$0xff] %vm25_vm0, %v232_v49 }
 0x1b4   :  { %v240_v51 = vld [vmem:[#allocation2 + $0x8] sm:$0xff] }
 0x1b5   :  { %v249_v52 = vadd.f32 %v271_v50, %v240_v51 }
 0x1b6   :  { %v239_v53 = vld [vmem:[#allocation2] sm:$0xff] }
 0x1b7   :  { %v248_v54 = vadd.f32 %v271_v50, %v239_v53  ;;  %251 = vst.msk [vmem:[#allocation3 + $0x8] sm:$0xff] %vm25_vm0, %v249_v52 }
 0x1b9   :  { %250 = vst.msk [vmem:[#allocation3] sm:$0xff] %vm25_vm0, %v248_v54 }
 0x1ba   :  { %361 = shalt.err (!%p358_p4)
}
 0x1bb   :  { %s374_s13 = smov 128   ;;  %s375_s4 = smov 8  }
 0x1bc   :  { %263 = dma.vmem_to_hbm [thread:$0]  %s258_s11, 256, %s494_s5, [#allocation4], %s374_s13, %s374_s13, %s375_s4  }
 0x1bd   :  { %370 = dma.done.wait [#allocation4], 256  }
 0x1be   :  { %371 = vsyncadd [#allocation4], 4294967040 }
 0x1bf   :  { %267 = vsyncpa [#allocation4], 1 }

</bundles_post_ra>
